<compile_context>
chip_gen: v7x
topology: tpu7x:2x2x1
jax: 0.10.0
libtpu: 0.0.40
codegen_flags: <defaults>
</compile_context>

<pallas_src>
import functools
import math

import numpy as np
import jax
import jax.numpy as jnp
from jax.experimental import pallas as pl
from jax.experimental.pallas import tpu as pltpu

LANE = 128
NEG_BIG = -1.0e30          # additive mask for padded key columns


def _round_up(a, b):
    return (a + b - 1) // b * b


def _pick_vmem_limit(estimate_bytes):
    """VMEM limit with headroom below physical capacity (v7x: 64 MiB/TC)."""
    try:
        cap = int(pltpu.get_tpu_info().vmem_capacity_bytes)
    except Exception:
        cap = 64 << 20
    upper = max(cap - (16 << 20), cap // 2)
    return int(min(max(int(estimate_bytes), 32 << 20), upper))


# ----------------------- prologue: fused Q|K|V projection -------------------

def _qkv_proj_kernel(x_ref, w_ref, b_ref, q_ref, k_ref, v_ref, *, dh_pad):
    acc = jnp.dot(x_ref[...], w_ref[...],
                  preferred_element_type=jnp.float32) + b_ref[...]
    q_ref[...] = acc[:, :dh_pad].astype(q_ref.dtype)
    k_ref[...] = acc[:, dh_pad:2 * dh_pad].astype(k_ref.dtype)
    v_ref[...] = acc[:, 2 * dh_pad:].astype(v_ref.dtype)


def _project_qkv(x_p, wqkv, bqkv, dh_pad, mxu_dtype):
    n_proj, dim_in = x_p.shape
    tp = 128                       # n_proj is always a multiple of 128
    out_sds = jax.ShapeDtypeStruct((n_proj, dh_pad), mxu_dtype)
    isz = np.dtype(mxu_dtype).itemsize
    cost = pl.CostEstimate(
        flops=int(2 * n_proj * dim_in * 3 * dh_pad),
        transcendentals=0,
        bytes_accessed=int(x_p.size * isz + wqkv.size * isz + bqkv.size * 4
                           + 3 * n_proj * dh_pad * isz))
    return pl.pallas_call(
        functools.partial(_qkv_proj_kernel, dh_pad=dh_pad),
        out_shape=(out_sds, out_sds, out_sds),
        grid_spec=pltpu.PrefetchScalarGridSpec(
            num_scalar_prefetch=0,
            grid=(n_proj // tp,),
            in_specs=[
                pl.BlockSpec((tp, dim_in), lambda i: (i, 0)),
                pl.BlockSpec((dim_in, 3 * dh_pad), lambda i: (0, 0)),
                pl.BlockSpec((1, 3 * dh_pad), lambda i: (0, 0)),
            ],
            out_specs=[
                pl.BlockSpec((tp, dh_pad), lambda i: (i, 0)),
                pl.BlockSpec((tp, dh_pad), lambda i: (i, 0)),
                pl.BlockSpec((tp, dh_pad), lambda i: (i, 0)),
            ]),
        compiler_params=pltpu.CompilerParams(dimension_semantics=("parallel",)),
        cost_estimate=cost,
    )(x_p, wqkv, bqkv)


# ------------------- main attention kernel (online softmax) -----------------

def _attn_kernel(q_ref, kT_ref, v_ref, bc_ref, segq_ref, segk_ref, cmask_ref,
                 out_ref, m_sc, l_sc, acc_sc, *, scale, exact_recip, mxu_dtype):
    """One (query-tile, key-tile) step.

    q_ref   : [TQ, dh_pad]   mxu_dtype   projected queries (resident over key axis)
    kT_ref  : [dh_pad, TK]   mxu_dtype   projected keys, pre-transposed
    v_ref   : [TK, dh_pad]   mxu_dtype   projected values
    bc_ref  : [TQ, TK]       bias dtype  fused spatial + edge encoding (b + c)
    segq_ref: [TQ, 1]        int32       graph id per query row (-1 = padding)
    segk_ref: [1, TK]        int32       graph id per key column (-1 = padding)
    cmask_ref:[1, TK]        f32         0 for real columns, -1e30 for padding
    out_ref : [TQ, dh_pad]   f32
    """
    j = pl.program_id(1)

    @pl.when(j == 0)
    def _():
        m_sc[...] = jnp.full_like(m_sc, -jnp.inf)
        l_sc[...] = jnp.zeros_like(l_sc)
        acc_sc[...] = jnp.zeros_like(acc_sc)

    # Scores on the MXU; kT is pre-transposed so no XLU transpose per step.
    scores = jnp.dot(q_ref[...], kT_ref[...],
                     preferred_element_type=jnp.float32) * scale

    in_block = segq_ref[...] == segk_ref[...]            # block-diagonal mask
    bc = bc_ref[...].astype(jnp.float32)
    # Module semantics in a single select:
    #   in-block : scores/sqrt(dq) + b + c
    #   off-block: (0 + b + c) * -1e6
    # plus an additive -1e30 on padded key columns (absent in the module).
    logits = jnp.where(in_block, scores + bc, -1.0e6 * bc) + cmask_ref[...]

    # Online softmax (f32 elementwise; exp could be bf16 on v6e/v7x EUP).
    m_prev = m_sc[...]
    m_new = jnp.maximum(m_prev, jnp.max(logits, axis=-1, keepdims=True))
    alpha = jnp.exp(m_prev - m_new)
    p = jnp.exp(logits - m_new)
    # Denominator spans the full row (module softmaxes everything); the
    # numerator is zeroed off-block (mask_zeros is applied before @ V).
    l_sc[...] = alpha * l_sc[...] + jnp.sum(p, axis=-1, keepdims=True)
    p_num = jnp.where(in_block, p, 0.0).astype(mxu_dtype)
    acc_sc[...] = alpha * acc_sc[...] + jnp.dot(
        p_num, v_ref[...], preferred_element_type=jnp.float32)
    m_sc[...] = m_new

    @pl.when(j == pl.num_programs(1) - 1)
    def _():
        denom = l_sc[...]
        inv = (1.0 / denom) if exact_recip else pl.reciprocal(denom, approx=True)
        out_ref[...] = (acc_sc[...] * inv).astype(out_ref.dtype)


# ------------------------------ host precompute ------------------------------

def _compute_edge_encoding(edge_attr, edge_paths, num_nodes, edge_vector):
    """c[i,j] = mean_p <edge_vector[p], edge_attr[path_ij[p]]>; 0 if no path.

    Flat edge-list formulation: O(total path elements) host work, no dense
    [N, N, P, edge_dim] gather.
    """
    # TODO(synk): the ragged edge_paths dict has no clean Pallas equivalent; it
    # is flattened host-side (cache the result if paths are reused).
    ev = np.asarray(edge_vector, dtype=np.float32)
    ea = np.asarray(edge_attr, dtype=np.float32)
    P = ev.shape[0]
    srcs, dsts, poss, eids = [], [], [], []
    for src, dst_paths in edge_paths.items():
        for dst, path in dst_paths.items():
            p = list(path)[:P]
            for i, e in enumerate(p):
                srcs.append(int(src)); dsts.append(int(dst))
                poss.append(i); eids.append(int(e))
    c = np.zeros((num_nodes, num_nodes), dtype=np.float32)
    if srcs:
        dots = np.einsum("kd,kd->k", ev[np.asarray(poss)], ea[np.asarray(eids)])
        cnt = np.zeros((num_nodes, num_nodes), dtype=np.float32)
        np.add.at(c, (np.asarray(srcs), np.asarray(dsts)), dots)
        np.add.at(cnt, (np.asarray(srcs), np.asarray(dsts)), 1.0)
        c = np.where(cnt > 0, c / np.maximum(cnt, 1.0), 0.0).astype(np.float32)
    return c


def _segment_ids(num_nodes, n_pad, ptr):
    """int32 graph id per node; -1 marks padded rows/columns."""
    seg = np.full((n_pad,), -1, dtype=np.int32)
    if ptr is None:
        seg[:num_nodes] = 0
    else:
        ptr = np.asarray(ptr)
        for i in range(len(ptr) - 1):
            seg[int(ptr[i]):int(ptr[i + 1])] = i
    return seg


# --------------------------------- wrapper -----------------------------------

def graphormer_attention_head(x, edge_attr, b, edge_paths, params, ptr=None,
                              *, tq=256, tk=512, mxu_dtype=jnp.bfloat16):
    """Pallas forward of GraphormerAttentionHead.

    mxu_dtype=jnp.bfloat16 casts only MXU operands / the fused bias stream
    (f32 accumulation and f32 softmax); use jnp.float32 for exact numerics.
    """
    N, dim_in = x.shape
    dim_q = params["wq"].shape[1]
    dim_k = params["wv"].shape[1]
    assert params["wk"].shape[1] == dim_q, "q @ k.T requires dim_q == dim_k"
    dh_pad = _round_up(max(dim_q, dim_k, 1), LANE)       # lane-dense head dim

    exact = np.dtype(mxu_dtype) == np.dtype(jnp.float32)
    bias_dtype = jnp.float32 if exact else mxu_dtype

    # Tiles: multiples of 128 in both dims (legal + lane-dense for f32 & bf16).
    def _tile(req):
        return _round_up(min(max(int(req), LANE), _round_up(N, LANE)), LANE)
    tq = _tile(tq)
    tk = _tile(tk)
    n_q = _round_up(N, tq)
    n_k = _round_up(N, tk)
    n_proj = max(n_q, n_k)
    grid = (n_q // tq, n_k // tk)

    # ---- host-side precompute kept out of the kernel ----
    c = _compute_edge_encoding(edge_attr, edge_paths, N, params["edge_vector"])
    bc_np = np.zeros((n_q, n_k), dtype=np.float32)
    bc_np[:N, :N] = np.asarray(b, dtype=np.float32) + c
    bc = jnp.asarray(bc_np, dtype=bias_dtype)            # fused b + c stream

    seg = _segment_ids(N, n_proj, ptr)
    seg_q = jnp.asarray(seg[:n_q].reshape(n_q, 1))
    seg_k = jnp.asarray(seg[:n_k].reshape(1, n_k))

    cmask_np = np.zeros((1, n_k), dtype=np.float32)
    cmask_np[0, N:] = NEG_BIG
    cmask = jnp.asarray(cmask_np)

    # ---- Q|K|V projection prologue (computed ONCE, not per attention tile) ----
    x_p = jnp.pad(jnp.asarray(x, jnp.float32),
                  ((0, n_proj - N), (0, 0))).astype(mxu_dtype)

    def pad_w(w):
        w = jnp.asarray(w, jnp.float32)
        return jnp.pad(w, ((0, 0), (0, dh_pad - w.shape[1])))

    def pad_b(bb):
        bb = jnp.asarray(bb, jnp.float32).reshape(1, -1)
        return jnp.pad(bb, ((0, 0), (0, dh_pad - bb.shape[1])))

    wqkv = jnp.concatenate([pad_w(params["wq"]), pad_w(params["wk"]),
                            pad_w(params["wv"])], axis=1).astype(mxu_dtype)
    bqkv = jnp.concatenate([pad_b(params["bq"]), pad_b(params["bk"]),
                            pad_b(params["bv"])], axis=1)

    q_full, k_full, v_full = _project_qkv(x_p, wqkv, bqkv, dh_pad, mxu_dtype)
    q = q_full[:n_q]
    kT = jnp.transpose(k_full[:n_k])      # pre-transposed keys [dh_pad, n_k]
    v = v_full[:n_k]

    scale = 1.0 / math.sqrt(float(dim_q))

    # ---- VMEM budget & cost (post-restructure numbers) ----
    isz = np.dtype(mxu_dtype).itemsize
    bisz = np.dtype(bias_dtype).itemsize
    per_iter = (tq * dh_pad * isz + dh_pad * tk * isz + tk * dh_pad * isz
                + tq * tk * bisz + (tq + 2 * tk) * 4 + tq * dh_pad * 4)
    resident = (2 * tq + tq * dh_pad) * 4                # m/l/acc scratch
    vmem_limit = _pick_vmem_limit(2 * per_iter + resident + (8 << 20))

    cost = pl.CostEstimate(
        flops=int(4 * n_q * n_k * dh_pad + 10 * n_q * n_k),
        transcendentals=int(n_q * n_k + n_q * grid[1]),
        bytes_accessed=int((n_q * dh_pad + dh_pad * n_k + n_k * dh_pad) * isz
                           + n_q * n_k * bisz + (n_q + 2 * n_k) * 4
                           + n_q * dh_pad * 4))

    out = pl.pallas_call(
        functools.partial(_attn_kernel, scale=scale, exact_recip=exact,
                          mxu_dtype=mxu_dtype),
        out_shape=jax.ShapeDtypeStruct((n_q, dh_pad), jnp.float32),
        grid_spec=pltpu.PrefetchScalarGridSpec(
            num_scalar_prefetch=0,
            grid=grid,
            in_specs=[
                pl.BlockSpec((tq, dh_pad), lambda i, j: (i, 0)),   # Q tile
                pl.BlockSpec((dh_pad, tk), lambda i, j: (0, j)),   # K^T tile
                pl.BlockSpec((tk, dh_pad), lambda i, j: (j, 0)),   # V tile
                pl.BlockSpec((tq, tk), lambda i, j: (i, j)),       # fused b + c
                pl.BlockSpec((tq, 1), lambda i, j: (i, 0)),        # graph id (rows)
                pl.BlockSpec((1, tk), lambda i, j: (0, j)),        # graph id (cols)
                pl.BlockSpec((1, tk), lambda i, j: (0, j)),        # padded-col mask
            ],
            out_specs=pl.BlockSpec((tq, dh_pad), lambda i, j: (i, 0)),
            scratch_shapes=[pltpu.VMEM((tq, 1), jnp.float32),      # m
                            pltpu.VMEM((tq, 1), jnp.float32),      # l
                            pltpu.VMEM((tq, dh_pad), jnp.float32)]),  # acc
        compiler_params=pltpu.CompilerParams(
            dimension_semantics=("parallel", "arbitrary"),
            vmem_limit_bytes=vmem_limit),
        cost_estimate=cost,
    )(q, kT, v, bc, seg_q, seg_k, cmask)

    return out[:N, :dim_k]


# ------------------------------ pure-JAX reference ---------------------------

def _dense_masks(num_nodes, ptr):
    if ptr is None:
        ones = np.ones((num_nodes, num_nodes), dtype=np.float32)
        return ones, ones, ones
    qk = np.zeros((num_nodes, num_nodes), dtype=np.float32)
    neg = np.full((num_nodes, num_nodes), -1000000.0, dtype=np.float32)
    zer = np.zeros((num_nodes, num_nodes), dtype=np.float32)
    for i in range(len(ptr) - 1):
        s, e = int(ptr[i]), int(ptr[i + 1])
        qk[s:e, s:e] = 1.0
        neg[s:e, s:e] = 1.0
        zer[s:e, s:e] = 1.0
    return qk, neg, zer


def reference_forward(x, edge_attr, b, edge_paths, params, ptr=None,
                      mxu_dtype=jnp.float32):
    """Mirrors the PyTorch module semantics (bf16 option mirrors the kernel's
    MXU-operand casts with f32 accumulation)."""
    N = x.shape[0]
    c = jnp.asarray(_compute_edge_encoding(edge_attr, edge_paths, N,
                                           params["edge_vector"]))
    qk_mask, mask_neg, mask_zero = (jnp.asarray(m) for m in _dense_masks(N, ptr))

    cast = lambda t: jnp.asarray(t, jnp.float32).astype(mxu_dtype)
    bq = jnp.asarray(params["bq"], jnp.float32).reshape(1, -1)
    bk = jnp.asarray(params["bk"], jnp.float32).reshape(1, -1)
    bv = jnp.asarray(params["bv"], jnp.float32).reshape(1, -1)
    q = jnp.dot(cast(x), cast(params["wq"]), preferred_element_type=jnp.float32) + bq
    k = jnp.dot(cast(x), cast(params["wk"]), preferred_element_type=jnp.float32) + bk
    v = jnp.dot(cast(x), cast(params["wv"]), preferred_element_type=jnp.float32) + bv
    a = jax.lax.dot_general(cast(q), cast(k), (((1,), (1,)), ((), ())),
                            preferred_element_type=jnp.float32)
    a = a / (q.shape[-1] ** 0.5) * qk_mask
    a = (a + jnp.asarray(b, jnp.float32) + c) * mask_neg
    sm = jax.nn.softmax(a, axis=-1) * mask_zero
    return jnp.dot(cast(sm), cast(v), preferred_element_type=jnp.float32)


# ----------------------------------- demo ------------------------------------

if __name__ == "__main__":
    N = 24
    dim_in = 32
    dim_q = dim_k = 16
    edge_dim = 8
    max_path_distance = 4
    E = 12

    key = jax.random.PRNGKey(0)
    keys = jax.random.split(key, 12)

    params = {
        "edge_vector": jax.random.normal(keys[0], (max_path_distance, edge_dim), jnp.float32),
        "wq": 0.1 * jax.random.normal(keys[1], (dim_in, dim_q), jnp.float32),
        "bq": 0.1 * jax.random.normal(keys[2], (1, dim_q), jnp.float32),
        "wk": 0.1 * jax.random.normal(keys[3], (dim_in, dim_q), jnp.float32),
        "bk": 0.1 * jax.random.normal(keys[4], (1, dim_q), jnp.float32),
        "wv": 0.1 * jax.random.normal(keys[5], (dim_in, dim_k), jnp.float32),
        "bv": 0.1 * jax.random.normal(keys[6], (1, dim_k), jnp.float32),
    }

    x = jax.random.normal(keys[7], (N, dim_in), jnp.float32)
    edge_attr = jax.random.normal(keys[8], (E, edge_dim), jnp.float32)
    b = 0.1 * jax.random.normal(keys[9], (N, N), jnp.float32)

    edge_paths = {
        0: {1: [0], 2: [0, 3], 3: [0, 3, 5]},
        1: {0: [1], 2: [3], 4: [3, 6, 8, 10, 11]},   # truncated to max_path_distance
        2: {3: [5], 4: [6]},
        4: {0: [2, 1], 5: [7]},
        5: {6: [9], 7: [9, 11]},
        6: {7: [11]},
    }
    ptr = np.array([0, 10, 24], dtype=np.int32)

    # 1) f32 MXU path (exact module numerics) with ptr.
    out_f32 = jax.block_until_ready(
        graphormer_attention_head(x, edge_attr, b, edge_paths, params, ptr=ptr,
                                  mxu_dtype=jnp.float32))
    ref_f32 = reference_forward(x, edge_attr, b, edge_paths, params, ptr=ptr,
                                mxu_dtype=jnp.float32)
    np.testing.assert_allclose(np.asarray(out_f32), np.asarray(ref_f32),
                               rtol=1e-3, atol=1e-3)

    # 2) ptr=None path (same shapes -> no extra kernel compile).
    out_none = jax.block_until_ready(
        graphormer_attention_head(x, edge_attr, b, edge_paths, params, ptr=None,
                                  mxu_dtype=jnp.float32))
    ref_none = reference_forward(x, edge_attr, b, edge_paths, params, ptr=None,
                                 mxu_dtype=jnp.float32)
    np.testing.assert_allclose(np.asarray(out_none), np.asarray(ref_none),
                               rtol=1e-3, atol=1e-3)

    # 3) default bf16 MXU-operand path (perf configuration).
    out_bf16 = jax.block_until_ready(
        graphormer_attention_head(x, edge_attr, b, edge_paths, params, ptr=ptr))
    ref_bf16 = reference_forward(x, edge_attr, b, edge_paths, params, ptr=ptr,
                                 mxu_dtype=jnp.bfloat16)
    np.testing.assert_allclose(np.asarray(out_bf16), np.asarray(ref_bf16),
                               rtol=5e-2, atol=5e-2)

    # 4) larger batch: 2x2 grid exercises online softmax across key tiles and
    #    row/column padding.
    N2 = 150
    x2 = jax.random.normal(keys[10], (N2, dim_in), jnp.float32)
    b2 = 0.1 * jax.random.normal(keys[11], (N2, N2), jnp.float32)
    ptr2 = np.array([0, 70, 150], dtype=np.int32)
    out2 = jax.block_until_ready(
        graphormer_attention_head(x2, edge_attr, b2, edge_paths, params, ptr=ptr2,
                                  tq=128, tk=128, mxu_dtype=jnp.float32))
    ref2 = reference_forward(x2, edge_attr, b2, edge_paths, params, ptr=ptr2,
                             mxu_dtype=jnp.float32)
    np.testing.assert_allclose(np.asarray(out2), np.asarray(ref2),
                               rtol=1e-3, atol=1e-3)

    print("KERNEL_OK")
</pallas_src>

<mosaic_0001>
module attributes {stable_mosaic.version = 11 : i64} {
  func.func @_qkv_proj_kernel(%arg0: i32, %arg1: memref<128x32xf32, #tpu.memory_space<vmem>>, %arg2: memref<32x384xf32, #tpu.memory_space<vmem>>, %arg3: memref<1x384xf32, #tpu.memory_space<vmem>>, %arg4: memref<128x128xf32, #tpu.memory_space<vmem>>, %arg5: memref<128x128xf32, #tpu.memory_space<vmem>>, %arg6: memref<128x128xf32, #tpu.memory_space<vmem>>) attributes {dimension_semantics = [#tpu.dimension_semantics<parallel>], iteration_bounds = array<i64: 1>, scalar_prefetch = 0 : i64, scratch_operands = 0 : i64, tpu.core_type = #tpu.core_type<tc>, window_params = [{transform_indices = @transform_0, window_bounds = array<i64: 128, 32>}, {pipeline_mode = #tpu.pipeline_mode<synchronous>, transform_indices = @transform_1, window_bounds = array<i64: 32, 384>}, {pipeline_mode = #tpu.pipeline_mode<synchronous>, transform_indices = @transform_2, window_bounds = array<i64: 1, 384>}, {transform_indices = @transform_3, window_bounds = array<i64: 128, 128>}, {transform_indices = @transform_4, window_bounds = array<i64: 128, 128>}, {transform_indices = @transform_5, window_bounds = array<i64: 128, 128>}]} {
    %c0 = arith.constant 0 : index
    %c0_0 = arith.constant 0 : index
    %0 = vector.load %arg1[%c0, %c0_0] : memref<128x32xf32, #tpu.memory_space<vmem>>, vector<128x32xf32>
    %c0_1 = arith.constant 0 : index
    %c0_2 = arith.constant 0 : index
    %1 = vector.load %arg2[%c0_1, %c0_2] : memref<32x384xf32, #tpu.memory_space<vmem>>, vector<32x384xf32>
    %cst = arith.constant dense<0.000000e+00> : vector<128x384xf32>
    %2 = tpu.matmul %0, %1, %cst {dimension_numbers = #tpu.dot_dimension_numbers<[1], [0], [0], [1], [0, 0, 1, 1], [], []>} : vector<128x32xf32>, vector<32x384xf32>, vector<128x384xf32> -> vector<128x384xf32>
    %c0_3 = arith.constant 0 : index
    %c0_4 = arith.constant 0 : index
    %3 = vector.load %arg3[%c0_3, %c0_4] : memref<1x384xf32, #tpu.memory_space<vmem>>, vector<1x384xf32>
    %4 = vector.broadcast %3 : vector<1x384xf32> to vector<128x384xf32>
    %5 = arith.addf %2, %4 : vector<128x384xf32>
    %6 = vector.extract_strided_slice %5 {offsets = [0, 0], sizes = [128, 128], strides = [1, 1]} : vector<128x384xf32> to vector<128x128xf32>
    %c0_5 = arith.constant 0 : index
    %c0_6 = arith.constant 0 : index
    %7 = vector.load %arg4[%c0_5, %c0_6] : memref<128x128xf32, #tpu.memory_space<vmem>>, vector<128x128xf32>
    tpu.vector_store %arg4[%c0_5, %c0_6], %6 {strides = array<i32>} : memref<128x128xf32, #tpu.memory_space<vmem>>, vector<128x128xf32>,
    %8 = vector.extract_strided_slice %5 {offsets = [0, 128], sizes = [128, 128], strides = [1, 1]} : vector<128x384xf32> to vector<128x128xf32>
    %c0_7 = arith.constant 0 : index
    %c0_8 = arith.constant 0 : index
    %9 = vector.load %arg5[%c0_7, %c0_8] : memref<128x128xf32, #tpu.memory_space<vmem>>, vector<128x128xf32>
    tpu.vector_store %arg5[%c0_7, %c0_8], %8 {strides = array<i32>} : memref<128x128xf32, #tpu.memory_space<vmem>>, vector<128x128xf32>,
    %10 = vector.extract_strided_slice %5 {offsets = [0, 256], sizes = [128, 128], strides = [1, 1]} : vector<128x384xf32> to vector<128x128xf32>
    %c0_9 = arith.constant 0 : index
    %c0_10 = arith.constant 0 : index
    %11 = vector.load %arg6[%c0_9, %c0_10] : memref<128x128xf32, #tpu.memory_space<vmem>>, vector<128x128xf32>
    tpu.vector_store %arg6[%c0_9, %c0_10], %10 {strides = array<i32>} : memref<128x128xf32, #tpu.memory_space<vmem>>, vector<128x128xf32>,
    return
  }
  func.func @transform_0(%arg0: i32) -> (i32, i32) {
    %c0_i32 = arith.constant 0 : i32
    %c0_i32_0 = arith.constant 0 : i32
    return %arg0, %c0_i32 : i32, i32
  }
  func.func @transform_1(%arg0: i32) -> (i32, i32) {
    %c0_i32 = arith.constant 0 : i32
    %c0_i32_0 = arith.constant 0 : i32
    %c0_i32_1 = arith.constant 0 : i32
    return %c0_i32, %c0_i32_0 : i32, i32
  }
  func.func @transform_2(%arg0: i32) -> (i32, i32) {
    %c0_i32 = arith.constant 0 : i32
    %c0_i32_0 = arith.constant 0 : i32
    %c0_i32_1 = arith.constant 0 : i32
    return %c0_i32, %c0_i32_0 : i32, i32
  }
  func.func @transform_3(%arg0: i32) -> (i32, i32) {
    %c0_i32 = arith.constant 0 : i32
    %c0_i32_0 = arith.constant 0 : i32
    return %arg0, %c0_i32 : i32, i32
  }
  func.func @transform_4(%arg0: i32) -> (i32, i32) {
    %c0_i32 = arith.constant 0 : i32
    %c0_i32_0 = arith.constant 0 : i32
    return %arg0, %c0_i32 : i32, i32
  }
  func.func @transform_5(%arg0: i32) -> (i32, i32) {
    %c0_i32 = arith.constant 0 : i32
    %c0_i32_0 = arith.constant 0 : i32
    return %arg0, %c0_i32 : i32, i32
  }
}

</mosaic_0001>

<bundles_post_ra>
// kernel: tpu_custom_call.1
= control target key start
LH: loop header
LB: loop body
LE: loop exit
PB: predicated region body
PF: predicated region fallthrough
CT: control target
= control target key end

     0   :  { %11 = vsyncpa [#allocation3], 0  ;;  %v694_v7 = vmov 0.0   ;;  %vm64_vm0 = vcmask 261120   ;;  %s978_s0 = inlined_call_operand.vmem [shape: f32[128,32], index: 0, kind: input, shape index: {}]   ;;  %s979_s1 = inlined_call_operand.vmem [shape: f32[32,384], index: 1, kind: input, shape index: {}]   ;;  %s980_s2 = inlined_call_operand.vmem [shape: f32[1,384], index: 2, kind: input, shape index: {}]   ;;  %s981_s3 = inlined_call_operand.hbm [shape: f32[128,128], index: 3, kind: output, shape index: {0}]   ;;  %s982_s4 = inlined_call_operand.hbm [shape: f32[128,128], index: 4, kind: output, shape index: {1}]   ;;  %s983_s5 = inlined_call_operand.hbm [shape: f32[128,128], index: 5, kind: output, shape index: {2}]  }
   0x1   :  { %v36_v0 = vld [vmem:[%s979_s1 + $0x8] sm:$0xff]  ;;  %v39_v1 = vld [vmem:[%s979_s1 + $0x20] sm:$0xff]  ;;  %v38_v4 = vld [vmem:[%s979_s1 + $0x18] sm:$0xff]  ;;  %177 = vmatprep.mubr.f32.mxu0 %v694_v7  ;;  %249 = vmatprep.mubr.f32.mxu1 %v694_v7 }
   0x2   :  { %v35_v2 = vld [vmem:[%s979_s1] sm:$0xff]  ;;  %v598_v3 = vpack.c.bf16 %v39_v1, %v36_v0  ;;  %v42_v5 = vld [vmem:[%s979_s1 + $0x38] sm:$0xff]  ;;  %v45_v6 = vld [vmem:[%s979_s1 + $0x50] sm:$0xff] }
   0x3   :  { %v600_v8 = vpack.c.bf16 %v38_v4, %v35_v2  ;;  %v602_v9 = vpack.c.bf16 %v45_v6, %v42_v5  ;;  %v41_v10 = vld [vmem:[%s979_s1 + $0x30] sm:$0xff]  ;;  %v44_v11 = vld [vmem:[%s979_s1 + $0x48] sm:$0xff]  ;;  %v43_v16 = vld [vmem:[%s979_s1 + $0x40] sm:$0xff] }
   0x4   :  { %599 = vmatprep.subr.bf16.mxu0 %v598_v3  ;;  %614 = vmatprep.subr.bf16.mxu1 %v598_v3  ;;  %v37_v12 = vld [vmem:[%s979_s1 + $0x10] sm:$0xff]  ;;  %v40_v13 = vld [vmem:[%s979_s1 + $0x28] sm:$0xff]  ;;  %v604_v14 = vpack.c.bf16 %v44_v11, %v41_v10  ;;  %v46_v17 = vld [vmem:[%s979_s1 + $0x58] sm:$0xff] }
   0x5   :  { %601 = vmatpush1.bf16.msra.mxu0 %v600_v8  ;;  %616 = vmatpush1.bf16.msra.mxu1 %v600_v8  ;;  %v606_v15 = vpack.c.bf16 %v40_v13, %v37_v12  ;;  %v19_v18 = vld [vmem:[%s978_s0] sm:$0xff]  ;;  %v610_v20 = vpack.c.bf16 %v46_v17, %v43_v16 }
   0x6   :  { %603 = vmatprep.subr.bf16.mxu0 %v602_v9  ;;  %615 = vmatprep.subr.bf16.mxu1 %v602_v9  ;;  %v31_v19 = vld [vmem:[%s978_s0 + $0x60] sm:$0xff] }
   0x9   :  { %605 = vmatpush1.bf16.msra.mxu0 %v604_v14  ;;  %617 = vmatpush1.bf16.msra.mxu1 %v604_v14 }
   0xa   :  { %607 = vmatprep.subr.bf16.mxu1 %v606_v15 }
   0xb   :  { %12 = vsyncpa [#allocation5], 0  ;;  %v20_v21 = vld [vmem:[%s978_s0 + $0x8] sm:$0xff]  ;;  %v21_v23 = vld [vmem:[%s978_s0 + $0x10] sm:$0xff]  ;;  %v49_v35 = vlaneseq  ;;  %s696_s24 = smov [#allocation4]   ;;  %s697_s26 = smov [#allocation6]  }
   0xc   :  { %514 = vmatmul.mubr.msk.f32.vlgmr.msra.gmra.mrb[0].mxu0 %vm64_vm0, %v19_v18  ;;  %526 = vmatmul.mubr.msk.f32.vlgmr.msra.gmra.mrb[0].mxu1 %vm64_vm0, %v31_v19  ;;  %v32_v22 = vld [vmem:[%s978_s0 + $0x68] sm:$0xff]  ;;  %v33_v24 = vld [vmem:[%s978_s0 + $0x70] sm:$0xff]  ;;  %v22_v25 = vld [vmem:[%s978_s0 + $0x18] sm:$0xff]  ;;  %s484_s25 = sshll.u32 %s696_s24, 4  ;;  %s496_s27 = sshll.u32 %s697_s26, 4  ;;  %s919_s25 = int_to_ptr.vmem [resolvable:$true] %s484_s25  ;;  %s921_s27 = int_to_ptr.vmem [resolvable:$true] %s496_s27 }
   0xd   :  { %609 = vmatpush3.bf16.msra.mxu1 %v606_v15  ;;  %183 = vmatprep.mubr.f32.mxu0 %v694_v7  ;;  %v34_v26 = vld [vmem:[%s978_s0 + $0x78] sm:$0xff]  ;;  %v23_v27 = vld [vmem:[%s978_s0 + $0x20] sm:$0xff]  ;;  %v24_v28 = vld [vmem:[%s978_s0 + $0x28] sm:$0xff]  ;;  %v50_v36 = vshrl.u32 %v49_v35, 7 }
   0xe   :  { %255 = vmatprep.mubr.f32.mxu1 %v694_v7  ;;  %611 = vmatprep.subr.bf16.mxu1 %v610_v20  ;;  %v25_v29 = vld [vmem:[%s978_s0 + $0x30] sm:$0xff]  ;;  %v26_v30 = vld [vmem:[%s978_s0 + $0x38] sm:$0xff]  ;;  %v27_v31 = vld [vmem:[%s978_s0 + $0x40] sm:$0xff] }
   0xf   :  { %v28_v32 = vld [vmem:[%s978_s0 + $0x48] sm:$0xff]  ;;  %v29_v33 = vld [vmem:[%s978_s0 + $0x50] sm:$0xff]  ;;  %v30_v34 = vld [vmem:[%s978_s0 + $0x58] sm:$0xff]  ;;  %v51_v37 = vsub.s32 0, %v50_v36  ;;  %v55_v39 = vsub.s32 1, %v50_v36  ;;  %v59_v0 = vsub.s32 2, %v50_v36 }
  0x10   :  { %515 = vmatmul.mubr.msk.f32.gmra.mrb[2].mxu0 %vm64_vm0, %v20_v21  ;;  %527 = vmatmul.mubr.msk.f32.gmra.mrb[2].mxu1 %vm64_vm0, %v32_v22  ;;  %v47_v38 = vld [vmem:[%s980_s2] sm:$0x7]  ;;  %s695_s2 = smov [#allocation2]  }
  0x11   :  { %189 = vmatprep.mubr.f32.mxu0 %v694_v7  ;;  %261 = vmatprep.mubr.f32.mxu1 %v694_v7  ;;  %v865_v40 = vrot.slane %v47_v38, %v51_v37  ;;  %v867_v41 = vrot.slane %v47_v38, %v55_v39  ;;  %v883_v9 = vrot.slane %v47_v38, %v59_v0  ;;  %s472_s23 = sshll.u32 %s695_s2, 4  ;;  %s473_s23 = int_to_ptr.vmem [resolvable:$true] %s472_s23 }
  0x12   :  { %613 = vmatpush3.bf16.msra.mxu1 %v610_v20  ;;  %s624_s28 = scalar_lea.vmem %s473_s23, 2048  ;;  %p629_p1 = scmp.lt.s32.totalorder %s473_s23, %s473_s23 }
  0x13   :  { %p625_p0 = scmp.ne.s32.totalorder %s473_s23, %s624_s28  ;;  %p630_p2 = scmp.lt.s32.totalorder %s624_s28, %s624_s28 }
  0x14   :  { %516 = vmatmul.mubr.msk.f32.gmra.mrb[4].mxu0 %vm64_vm0, %v21_v23  ;;  %528 = vmatmul.mubr.msk.f32.gmra.mrb[4].mxu1 %vm64_vm0, %v33_v24 }
  0x15   :  { %195 = vmatprep.mubr.f32.mxu0 %v694_v7  ;;  %267 = vmatprep.mubr.f32.mxu1 %v694_v7  ;;  %p631_p3 = por %p630_p2, %p629_p1 }
  0x17   :  { %p632_p4 = pnand %p631_p3, %p625_p0 }
  0x18   :  { %517 = vmatmul.mubr.msk.f32.gmra.mrb[6].mxu0 %vm64_vm0, %v22_v25  ;;  %529 = vmatmul.mubr.msk.f32.gmra.mrb[6].mxu1 %vm64_vm0, %v34_v26 }
  0x19   :  { %201 = vmatprep.mubr.f32.mxu0 %v694_v7  ;;  %574 = vmatprep.mubr.msk.f32.mxu1 %vm64_vm0, %v19_v18 }
  0x1c   :  { %518 = vmatmul.mubr.msk.f32.gmra.mrb[8].mxu0 %vm64_vm0, %v23_v27  ;;  %575 = vmatmul.mubr.msk.f32.vlgmr.msra.gmra.mrb[8].mxu1 %vm64_vm0, %v20_v21 }
  0x1d   :  { %207 = vmatprep.mubr.f32.mxu0 %v694_v7  ;;  %577 = vmatprep.mubr.msk.f32.mxu1 %vm64_vm0, %v21_v23 }
  0x20   :  { %519 = vmatmul.mubr.msk.f32.gmra.mrb[10].mxu0 %vm64_vm0, %v24_v28  ;;  %578 = vmatmul.mubr.msk.f32.gmra.mrb[10].mxu1 %vm64_vm0, %v22_v25 }
  0x21   :  { %213 = vmatprep.mubr.f32.mxu0 %v694_v7  ;;  %580 = vmatprep.mubr.msk.f32.mxu1 %vm64_vm0, %v23_v27 }
  0x24   :  { %520 = vmatmul.mubr.msk.f32.gmra.mrb[12].mxu0 %vm64_vm0, %v25_v29  ;;  %581 = vmatmul.mubr.msk.f32.gmra.mrb[12].mxu1 %vm64_vm0, %v24_v28 }
  0x25   :  { %219 = vmatprep.mubr.f32.mxu0 %v694_v7  ;;  %583 = vmatprep.mubr.msk.f32.mxu1 %vm64_vm0, %v25_v29 }
  0x28   :  { %521 = vmatmul.mubr.msk.f32.gmra.mrb[14].mxu0 %vm64_vm0, %v26_v30  ;;  %584 = vmatmul.mubr.msk.f32.gmra.mrb[14].mxu1 %vm64_vm0, %v26_v30 }
  0x29   :  { %225 = vmatprep.mubr.f32.mxu0 %v694_v7  ;;  %586 = vmatprep.mubr.msk.f32.mxu1 %vm64_vm0, %v27_v31 }
  0x2c   :  { %522 = vmatmul.mubr.msk.f32.gmra.mrb[16].mxu0 %vm64_vm0, %v27_v31  ;;  %587 = vmatmul.mubr.msk.f32.gmra.mrb[16].mxu1 %vm64_vm0, %v28_v32 }
  0x2d   :  { %231 = vmatprep.mubr.f32.mxu0 %v694_v7  ;;  %589 = vmatprep.mubr.msk.f32.mxu1 %vm64_vm0, %v29_v33 }
  0x30   :  { %523 = vmatmul.mubr.msk.f32.gmra.mrb[18].mxu0 %vm64_vm0, %v28_v32  ;;  %590 = vmatmul.mubr.msk.f32.gmra.mrb[18].mxu1 %vm64_vm0, %v30_v34 }
  0x31   :  { %237 = vmatprep.mubr.f32.mxu0 %v694_v7  ;;  %592 = vmatprep.mubr.msk.f32.mxu1 %vm64_vm0, %v31_v19 }
  0x34   :  { %524 = vmatmul.mubr.msk.f32.gmra.mrb[20].mxu0 %vm64_vm0, %v29_v33  ;;  %593 = vmatmul.mubr.msk.f32.gmra.mrb[20].mxu1 %vm64_vm0, %v32_v22 }
  0x35   :  { %243 = vmatprep.mubr.f32.mxu0 %v694_v7  ;;  %595 = vmatprep.mubr.msk.f32.mxu1 %vm64_vm0, %v33_v24 }
  0x38   :  { %525 = vmatmul.mubr.msk.f32.gmra.mrb[22].mxu0 %vm64_vm0, %v30_v34  ;;  %596 = vmatmul.mubr.msk.f32.gmra.mrb[22].mxu1 %vm64_vm0, %v34_v26 }
  0xdf   :  { %v179_v42 = vpop.f32.mrb[0].mxu0  ;;  %v251_v43 = vpop.f32.mrb[0].mxu1 }
  0xe0   :  { %v180_v44 = vadd.f32 %v179_v42, %v865_v40  ;;  %v252_v45 = vadd.f32 %v251_v43, %v865_v40  ;;  %v181_v46 = vpop.f32.mrb[1].mxu0  ;;  %v253_v47 = vpop.f32.mrb[1].mxu1 }
  0xe1   :  { %v182_v48 = vadd.f32 %v181_v46, %v867_v41  ;;  %v254_v49 = vadd.f32 %v253_v47, %v867_v41 }
  0xe2   :  { %419 = vst [vmem:[#allocation2] sm:$0xff] %v180_v44  ;;  %431 = vst [vmem:[#allocation2 + $0x60] sm:$0xff] %v252_v45 }
  0xe3   :  { %435 = vst [vmem:[#allocation4] sm:$0xff] %v182_v48  ;;  %447 = vst [vmem:[#allocation4 + $0x60] sm:$0xff] %v254_v49  ;;  %v185_v50 = vpop.f32.mrb[2].mxu0  ;;  %v257_v51 = vpop.f32.mrb[2].mxu1 }
  0xe4   :  { %v186_v52 = vadd.f32 %v185_v50, %v865_v40  ;;  %v258_v53 = vadd.f32 %v257_v51, %v865_v40  ;;  %v187_v54 = vpop.f32.mrb[3].mxu0  ;;  %v259_v55 = vpop.f32.mrb[3].mxu1 }
  0xe5   :  { %v188_v56 = vadd.f32 %v187_v54, %v867_v41  ;;  %v260_v57 = vadd.f32 %v259_v55, %v867_v41 }
  0xe6   :  { %420 = vst [vmem:[#allocation2 + $0x8] sm:$0xff] %v186_v52  ;;  %432 = vst [vmem:[#allocation2 + $0x68] sm:$0xff] %v258_v53 }
  0xe7   :  { %436 = vst [vmem:[#allocation4 + $0x8] sm:$0xff] %v188_v56  ;;  %448 = vst [vmem:[#allocation4 + $0x68] sm:$0xff] %v260_v57  ;;  %v191_v58 = vpop.f32.mrb[4].mxu0  ;;  %v263_v59 = vpop.f32.mrb[4].mxu1 }
  0xe8   :  { %v192_v60 = vadd.f32 %v191_v58, %v865_v40  ;;  %v264_v61 = vadd.f32 %v263_v59, %v865_v40  ;;  %v193_v62 = vpop.f32.mrb[5].mxu0  ;;  %v265_v63 = vpop.f32.mrb[5].mxu1 }
  0xe9   :  { %v194_v1 = vadd.f32 %v193_v62, %v867_v41  ;;  %v266_v2 = vadd.f32 %v265_v63, %v867_v41 }
  0xea   :  { %421 = vst [vmem:[#allocation2 + $0x10] sm:$0xff] %v192_v60  ;;  %433 = vst [vmem:[#allocation2 + $0x70] sm:$0xff] %v264_v61 }
  0xeb   :  { %437 = vst [vmem:[#allocation4 + $0x10] sm:$0xff] %v194_v1  ;;  %449 = vst [vmem:[#allocation4 + $0x70] sm:$0xff] %v266_v2  ;;  %v197_v3 = vpop.f32.mrb[6].mxu0  ;;  %v269_v4 = vpop.f32.mrb[6].mxu1 }
  0xec   :  { %v198_v5 = vadd.f32 %v197_v3, %v865_v40  ;;  %v270_v6 = vadd.f32 %v269_v4, %v865_v40  ;;  %v199_v7 = vpop.f32.mrb[7].mxu0  ;;  %v271_v8 = vpop.f32.mrb[7].mxu1 }
  0xed   :  { %v200_v10 = vadd.f32 %v199_v7, %v867_v41  ;;  %v272_v11 = vadd.f32 %v271_v8, %v867_v41 }
  0xee   :  { %422 = vst [vmem:[#allocation2 + $0x18] sm:$0xff] %v198_v5  ;;  %434 = vst [vmem:[#allocation2 + $0x78] sm:$0xff] %v270_v6 }
  0xef   :  { %438 = vst [vmem:[#allocation4 + $0x18] sm:$0xff] %v200_v10  ;;  %450 = vst [vmem:[#allocation4 + $0x78] sm:$0xff] %v272_v11  ;;  %v203_v12 = vpop.f32.mrb[8].mxu0  ;;  %v576_v13 = vpop.f32.mrb[8].mxu1 }
  0xf0   :  { %v204_v14 = vadd.f32 %v203_v12, %v865_v40  ;;  %v346_v15 = vadd.f32 %v576_v13, %v883_v9  ;;  %v205_v16 = vpop.f32.mrb[9].mxu0  ;;  %v340_v17 = vpop.f32.mrb[9].mxu1 }
  0xf1   :  { %v206_v18 = vadd.f32 %v205_v16, %v867_v41  ;;  %v341_v19 = vadd.f32 %v340_v17, %v883_v9 }
  0xf2   :  { %423 = vst [vmem:[#allocation2 + $0x20] sm:$0xff] %v204_v14  ;;  %452 = vst [vmem:[#allocation6 + $0x8] sm:$0xff] %v346_v15 }
  0xf3   :  { %439 = vst [vmem:[#allocation4 + $0x20] sm:$0xff] %v206_v18  ;;  %451 = vst [vmem:[#allocation6] sm:$0xff] %v341_v19  ;;  %v209_v20 = vpop.f32.mrb[10].mxu0  ;;  %v579_v21 = vpop.f32.mrb[10].mxu1 }
  0xf4   :  { %v210_v22 = vadd.f32 %v209_v20, %v865_v40  ;;  %v356_v23 = vadd.f32 %v579_v21, %v883_v9  ;;  %v211_v24 = vpop.f32.mrb[11].mxu0  ;;  %v350_v25 = vpop.f32.mrb[11].mxu1 }
  0xf5   :  { %v212_v26 = vadd.f32 %v211_v24, %v867_v41  ;;  %v351_v27 = vadd.f32 %v350_v25, %v883_v9 }
  0xf6   :  { %424 = vst [vmem:[#allocation2 + $0x28] sm:$0xff] %v210_v22  ;;  %454 = vst [vmem:[#allocation6 + $0x18] sm:$0xff] %v356_v23 }
  0xf7   :  { %440 = vst [vmem:[#allocation4 + $0x28] sm:$0xff] %v212_v26  ;;  %453 = vst [vmem:[#allocation6 + $0x10] sm:$0xff] %v351_v27  ;;  %v215_v28 = vpop.f32.mrb[12].mxu0  ;;  %v582_v29 = vpop.f32.mrb[12].mxu1 }
  0xf8   :  { %v216_v30 = vadd.f32 %v215_v28, %v865_v40  ;;  %v366_v31 = vadd.f32 %v582_v29, %v883_v9  ;;  %v217_v32 = vpop.f32.mrb[13].mxu0  ;;  %v360_v33 = vpop.f32.mrb[13].mxu1 }
  0xf9   :  { %v218_v34 = vadd.f32 %v217_v32, %v867_v41  ;;  %v361_v35 = vadd.f32 %v360_v33, %v883_v9 }
  0xfa   :  { %425 = vst [vmem:[#allocation2 + $0x30] sm:$0xff] %v216_v30  ;;  %456 = vst [vmem:[#allocation6 + $0x28] sm:$0xff] %v366_v31 }
  0xfb   :  { %441 = vst [vmem:[#allocation4 + $0x30] sm:$0xff] %v218_v34  ;;  %455 = vst [vmem:[#allocation6 + $0x20] sm:$0xff] %v361_v35  ;;  %v221_v36 = vpop.f32.mrb[14].mxu0  ;;  %v585_v37 = vpop.f32.mrb[14].mxu1 }
  0xfc   :  { %v222_v38 = vadd.f32 %v221_v36, %v865_v40  ;;  %v376_v39 = vadd.f32 %v585_v37, %v883_v9  ;;  %v223_v42 = vpop.f32.mrb[15].mxu0  ;;  %v370_v43 = vpop.f32.mrb[15].mxu1 }
  0xfd   :  { %v224_v44 = vadd.f32 %v223_v42, %v867_v41  ;;  %v371_v45 = vadd.f32 %v370_v43, %v883_v9 }
  0xfe   :  { %426 = vst [vmem:[#allocation2 + $0x38] sm:$0xff] %v222_v38  ;;  %458 = vst [vmem:[#allocation6 + $0x38] sm:$0xff] %v376_v39 }
  0xff   :  { %442 = vst [vmem:[#allocation4 + $0x38] sm:$0xff] %v224_v44  ;;  %457 = vst [vmem:[#allocation6 + $0x30] sm:$0xff] %v371_v45  ;;  %v227_v46 = vpop.f32.mrb[16].mxu0  ;;  %v588_v47 = vpop.f32.mrb[16].mxu1 }
 0x100   :  { %v228_v48 = vadd.f32 %v227_v46, %v865_v40  ;;  %v386_v49 = vadd.f32 %v588_v47, %v883_v9  ;;  %v229_v50 = vpop.f32.mrb[17].mxu0  ;;  %v380_v51 = vpop.f32.mrb[17].mxu1 }
 0x101   :  { %v230_v52 = vadd.f32 %v229_v50, %v867_v41  ;;  %v381_v53 = vadd.f32 %v380_v51, %v883_v9 }
 0x102   :  { %427 = vst [vmem:[#allocation2 + $0x40] sm:$0xff] %v228_v48  ;;  %460 = vst [vmem:[#allocation6 + $0x48] sm:$0xff] %v386_v49 }
 0x103   :  { %443 = vst [vmem:[#allocation4 + $0x40] sm:$0xff] %v230_v52  ;;  %459 = vst [vmem:[#allocation6 + $0x40] sm:$0xff] %v381_v53  ;;  %v233_v54 = vpop.f32.mrb[18].mxu0  ;;  %v591_v55 = vpop.f32.mrb[18].mxu1 }
 0x104   :  { %v234_v56 = vadd.f32 %v233_v54, %v865_v40  ;;  %v396_v57 = vadd.f32 %v591_v55, %v883_v9  ;;  %v235_v58 = vpop.f32.mrb[19].mxu0  ;;  %v390_v59 = vpop.f32.mrb[19].mxu1 }
 0x105   :  { %v236_v60 = vadd.f32 %v235_v58, %v867_v41  ;;  %v391_v61 = vadd.f32 %v390_v59, %v883_v9 }
 0x106   :  { %428 = vst [vmem:[#allocation2 + $0x48] sm:$0xff] %v234_v56  ;;  %462 = vst [vmem:[#allocation6 + $0x58] sm:$0xff] %v396_v57 }
 0x107   :  { %444 = vst [vmem:[#allocation4 + $0x48] sm:$0xff] %v236_v60  ;;  %461 = vst [vmem:[#allocation6 + $0x50] sm:$0xff] %v391_v61  ;;  %v239_v62 = vpop.f32.mrb[20].mxu0  ;;  %v594_v63 = vpop.f32.mrb[20].mxu1 }
 0x108   :  { %v240_v0 = vadd.f32 %v239_v62, %v865_v40  ;;  %v406_v1 = vadd.f32 %v594_v63, %v883_v9  ;;  %v241_v2 = vpop.f32.mrb[21].mxu0  ;;  %v400_v3 = vpop.f32.mrb[21].mxu1 }
 0x109   :  { %v242_v4 = vadd.f32 %v241_v2, %v867_v41  ;;  %v401_v5 = vadd.f32 %v400_v3, %v883_v9 }
 0x10a   :  { %429 = vst [vmem:[#allocation2 + $0x50] sm:$0xff] %v240_v0  ;;  %464 = vst [vmem:[#allocation6 + $0x68] sm:$0xff] %v406_v1 }
 0x10b   :  { %445 = vst [vmem:[#allocation4 + $0x50] sm:$0xff] %v242_v4  ;;  %463 = vst [vmem:[#allocation6 + $0x60] sm:$0xff] %v401_v5  ;;  %v245_v6 = vpop.f32.mrb[22].mxu0  ;;  %v597_v7 = vpop.f32.mrb[22].mxu1 }
 0x10c   :  { %v246_v8 = vadd.f32 %v245_v6, %v865_v40  ;;  %v416_v10 = vadd.f32 %v597_v7, %v883_v9  ;;  %v247_v11 = vpop.f32.mrb[23].mxu0  ;;  %v410_v12 = vpop.f32.mrb[23].mxu1 }
 0x10d   :  { %v248_v13 = vadd.f32 %v247_v11, %v867_v41  ;;  %v411_v14 = vadd.f32 %v410_v12, %v883_v9 }
 0x10e   :  { %430 = vst [vmem:[#allocation2 + $0x58] sm:$0xff] %v246_v8  ;;  %466 = vst [vmem:[#allocation6 + $0x78] sm:$0xff] %v416_v10 }
 0x10f   :  { %446 = vst [vmem:[#allocation4 + $0x58] sm:$0xff] %v248_v13  ;;  %465 = vst [vmem:[#allocation6 + $0x70] sm:$0xff] %v411_v14 }
 0x110   :  { %635 = shalt.err (!%p632_p4)
}
 0x111   :  { %s636_s6 = scalar_lea.hbm %s981_s3, 2048 }
 0x112   :  { %p637_p5 = scmp.ne.s32.totalorder %s981_s3, %s636_s6  ;;  %p640_p6 = scmp.lt.u32.totalorder %s636_s6, %s981_s3 }
 0x114   :  { %p642_p7 = pnand %p640_p6, %p637_p5 }
 0x116   :  { %645 = shalt.err (!%p642_p7)
}
 0x117   :  { %s698_s11 = smov 128   ;;  %s699_s12 = smov 8  }
 0x118   :  { %478 = dma.vmem_to_hbm [thread:$0]  %s473_s23, 2048, %s981_s3, [#allocation3], %s698_s11, %s698_s11, %s699_s12  }
 0x119   :  { %s646_s15 = scalar_lea.vmem %s919_s25, 2048  ;;  %p651_p9 = scmp.lt.s32.totalorder %s919_s25, %s919_s25 }
 0x11a   :  { %p647_p8 = scmp.ne.s32.totalorder %s919_s25, %s646_s15  ;;  %p652_p10 = scmp.lt.s32.totalorder %s646_s15, %s646_s15 }
 0x11c   :  { %p653_p11 = por %p652_p10, %p651_p9 }
 0x11e   :  { %p654_p12 = pnand %p653_p11, %p647_p8 }
 0x120   :  { %657 = shalt.err (!%p654_p12)
}
 0x121   :  { %s658_s18 = scalar_lea.hbm %s982_s4, 2048 }
 0x122   :  { %p659_p13 = scmp.ne.s32.totalorder %s982_s4, %s658_s18  ;;  %p662_p0 = scmp.lt.u32.totalorder %s658_s18, %s982_s4 }
 0x124   :  { %p664_p1 = pnand %p662_p0, %p659_p13 }
 0x126   :  { %667 = shalt.err (!%p664_p1)
}
 0x127   :  { %490 = dma.vmem_to_hbm [thread:$0]  %s919_s25, 2048, %s982_s4, [#allocation5], %s698_s11, %s698_s11, %s699_s12  }
 0x128   :  { %s668_s22 = scalar_lea.vmem %s921_s27, 2048  ;;  %p673_p3 = scmp.lt.s32.totalorder %s921_s27, %s921_s27 }
 0x129   :  { %p669_p2 = scmp.ne.s32.totalorder %s921_s27, %s668_s22  ;;  %p674_p4 = scmp.lt.s32.totalorder %s668_s22, %s668_s22 }
 0x12b   :  { %p675_p5 = por %p674_p4, %p673_p3 }
 0x12d   :  { %p676_p6 = pnand %p675_p5, %p669_p2 }
 0x12f   :  { %679 = shalt.err (!%p676_p6)
}
 0x130   :  { %s680_s24 = scalar_lea.hbm %s983_s5, 2048 }
 0x131   :  { %p681_p7 = scmp.ne.s32.totalorder %s983_s5, %s680_s24  ;;  %p684_p8 = scmp.lt.u32.totalorder %s680_s24, %s983_s5 }
 0x133   :  { %p686_p9 = pnand %p684_p8, %p681_p7 }
 0x135   :  { %689 = shalt.err (!%p686_p9)
}
 0x136   :  { %502 = dma.vmem_to_hbm [thread:$0]  %s921_s27, 2048, %s983_s5, [#allocation5], %s698_s11, %s698_s11, %s699_s12  }
 0x137   :  { %690 = dma.done.wait [#allocation3], 2048  }
 0x138   :  { %691 = vsyncadd [#allocation3], 4294965248 }
 0x139   :  { %692 = dma.done.wait [#allocation5], 4096  }
 0x13a   :  { %693 = vsyncadd [#allocation5], 4294963200 }
 0x13b   :  { %512 = vsyncpa [#allocation3], 1 }
 0x13c   :  { %513 = vsyncpa [#allocation5], 1 }

</bundles_post_ra>
